<compile_context>
chip_gen: v7x
topology: tpu7x:2x2x1
jax: 0.10.0
libtpu: 0.0.40
codegen_flags: <defaults>
</compile_context>

<pallas_src>
import functools
import math

import jax
import jax.numpy as jnp
from jax import lax
from jax.experimental import pallas as pl
from jax.experimental.pallas import tpu as pltpu


def _round_up(v, m):
    return ((v + m - 1) // m) * m


def _erf_f32(x):
    # Abramowitz & Stegun 7.1.26 rational approximation, |err| <= 1.5e-7.
    # Uses only abs / mul / add / exp / select / reciprocal -> Mosaic-lowerable.
    p = 0.3275911
    a1, a2, a3, a4, a5 = (0.254829592, -0.284496736, 1.421413741,
                          -1.453152027, 1.061405429)
    z = jnp.abs(x)
    t = pl.reciprocal(1.0 + p * z)      # exact; approx=True would cost ~1e-4 error
    poly = ((((a5 * t + a4) * t + a3) * t + a2) * t + a1) * t
    y = 1.0 - poly * jnp.exp(-z * z)
    return jnp.where(x >= 0, y, -y)


def _gelu_exact(x):
    # x * Phi(x) via erf; matches torch.nn.GELU() (erf form) to ~1.5e-7.
    return 0.5 * x * (1.0 + _erf_f32(x * 0.7071067811865476))


def _adapter_kernel(x_ref, g_ref, b_ref,
                    wd_ref, bd_ref, wu_ref, bu_ref,
                    w1_ref, b1_ref, w2_ref, b2_ref,
                    o_ref, acc_ref, *, scale, ln_eps):
    k = pl.program_id(1)                                # H-chunk (reduction) axis

    @pl.when(k == 0)
    def _init():
        acc_ref[...] = jnp.zeros_like(acc_ref)

    x_in = x_ref[...]                                   # (TM, D), native dtype

    # ---- residual = mlp(x), streamed over the H grid axis --------------------
    # h chunk: (TM, hk) f32; partial residual accumulates into VMEM scratch so
    # w1/w2 never need to be fully resident.
    h = jnp.dot(x_in.astype(w1_ref.dtype), w1_ref[...],
                preferred_element_type=jnp.float32)
    h = _gelu_exact(h + b1_ref[...].astype(jnp.float32))
    acc_ref[...] += jnp.dot(h.astype(w2_ref.dtype), w2_ref[...],
                            preferred_element_type=jnp.float32)

    # ---- finalize on the last H chunk: LN -> down/ReLU -> up -> +residual ----
    @pl.when(k == pl.num_programs(1) - 1)
    def _finalize():
        residual = acc_ref[...] + b2_ref[...].astype(jnp.float32)

        xf = x_in.astype(jnp.float32)
        mean = jnp.mean(xf, axis=-1, keepdims=True)
        var = jnp.mean(jnp.square(xf - mean), axis=-1, keepdims=True)
        xn = (xf - mean) * lax.rsqrt(var + ln_eps)
        xn = xn * g_ref[...].astype(jnp.float32) + b_ref[...].astype(jnp.float32)

        down = jnp.dot(xn.astype(wd_ref.dtype), wd_ref[...],
                       preferred_element_type=jnp.float32)
        down = jnp.maximum(down + bd_ref[...].astype(jnp.float32), 0.0)
        # TODO(synk): training-mode dropout needs pltpu.prng_seed + prng_random_bits mask.

        up = jnp.dot(down.astype(wu_ref.dtype), wu_ref[...],
                     preferred_element_type=jnp.float32)
        up = up + bu_ref[...].astype(jnp.float32)
        if scale != 1.0:                                 # trace-time elision
            up = up * scale
        o_ref[...] = (up + residual).astype(o_ref.dtype)


def _vmem_limit_bytes():
    cap = 64 * 1024 * 1024                               # conservative default (v7x per-TC)
    try:
        cap = int(getattr(pltpu.get_tpu_info(), "vmem_capacity_bytes", cap)) or cap
    except Exception:
        pass
    return int(cap * 3 // 4)                             # leave ~25% for Mosaic scratch


def adapter_forward(x, params, *, scale=1.0, ln_eps=1e-5, tm=256, h_chunk=512):
    """x: (M, D) tokens -> (M, D).  tm up to 512 (f32) / 1024 (bf16) pays on v6e."""
    M, D = x.shape
    Bn = params["wd"].shape[1]     # bottleneck
    H = params["w1"].shape[1]      # mlp hidden

    # -- token tiling: even number of grid steps (>=2 when possible) so both
    #    v7x TensorCores get work; tm_eff re-derived so padding stays minimal.
    sub = 8 if x.dtype.itemsize == 4 else 16             # f32 / bf16 sublane pack
    tm_cap = _round_up(min(tm, _round_up(M, sub)), sub)
    num_m = max(pl.cdiv(M, tm_cap), 1)
    if num_m % 2 == 1 and M > sub:
        num_m += 1
    tm_eff = _round_up(pl.cdiv(M, num_m), sub)
    Mp = tm_eff * num_m
    xp = x if Mp == M else jnp.pad(x, ((0, Mp - M), (0, 0)))

    # -- bottleneck lane-padded to 128 (zero cols/rows are inert through ReLU/up)
    Bn_p = _round_up(Bn, 128)
    wd, bd, wu = params["wd"], params["bd"], params["wu"]
    if Bn_p != Bn:
        wd = jnp.pad(wd, ((0, 0), (0, Bn_p - Bn)))
        bd = jnp.pad(bd, ((0, 0), (0, Bn_p - Bn)))
        wu = jnp.pad(wu, ((0, Bn_p - Bn), (0, 0)))

    # -- MLP hidden: pad to 128, pick the largest 128-multiple chunk dividing it
    Hp = _round_up(H, 128)
    hk = _round_up(min(max(h_chunk, 128), Hp), 128)
    while Hp % hk != 0:                                   # terminates: 128 | Hp
        hk -= 128
    w1, b1, w2 = params["w1"], params["b1"], params["w2"]
    if Hp != H:                                           # zero pad -> gelu(0)=0, w2 rows 0
        w1 = jnp.pad(w1, ((0, 0), (0, Hp - H)))
        b1 = jnp.pad(b1, ((0, 0), (0, Hp - H)))
        w2 = jnp.pad(w2, ((0, Hp - H), (0, 0)))
    num_h = Hp // hk

    kernel = functools.partial(_adapter_kernel, scale=float(scale), ln_eps=ln_eps)

    tok_in = pl.BlockSpec((tm_eff, D), lambda i, k: (i, 0))
    tok_out = pl.BlockSpec((tm_eff, D), lambda i, k: (i, 0))
    # Constant-index params never change block -> single-buffer them.
    const = lambda shape: pl.BlockSpec(shape, lambda i, k: (0, 0),
                                       pipeline_mode=pl.Buffered(1))
    # Streamed MLP weights keep default double-buffering so DMA overlaps the MXU.
    w1_spec = pl.BlockSpec((D, hk), lambda i, k: (0, k))
    b1_spec = pl.BlockSpec((1, hk), lambda i, k: (0, k))
    w2_spec = pl.BlockSpec((hk, D), lambda i, k: (k, 0))

    itemsize = x.dtype.itemsize
    const_bytes = sum(int(p.size) * p.dtype.itemsize for p in
                      (params["ln_g"], params["ln_b"], wd, bd, wu,
                       params["bu"], params["b2"]))
    stream_bytes = sum(int(p.size) * p.dtype.itemsize for p in (w1, b1, w2))
    cost = pl.CostEstimate(
        flops=int(4 * Mp * D * (Hp + Bn_p)),
        transcendentals=int(2 * Mp * Hp),                 # exp + reciprocal per GELU elt
        bytes_accessed=int(2 * Mp * D * itemsize + const_bytes
                           + num_m * stream_bytes))       # w1/b1/w2 re-streamed per M tile

    out = pl.pallas_call(
        kernel,
        out_shape=jax.ShapeDtypeStruct((Mp, D), x.dtype),
        grid_spec=pltpu.PrefetchScalarGridSpec(
            num_scalar_prefetch=0,
            grid=(num_m, num_h),                          # (parallel tokens, arbitrary H)
            in_specs=[
                tok_in,                       # x (resident across the H axis)
                const((1, D)),                # ln gamma
                const((1, D)),                # ln beta
                const((D, Bn_p)),             # down_proj weight (D, bottleneck_padded)
                const((1, Bn_p)),             # down_proj bias
                const((Bn_p, D)),             # up_proj weight (bottleneck_padded, D)
                const((1, D)),                # up_proj bias
                w1_spec,                      # mlp fc1 weight (streamed over H)
                b1_spec,                      # mlp fc1 bias   (streamed over H)
                w2_spec,                      # mlp fc2 weight (streamed over H)
                const((1, D)),                # mlp fc2 bias
            ],
            out_specs=tok_out,
            scratch_shapes=[pltpu.VMEM((tm_eff, D), jnp.float32)],  # residual accumulator
        ),
        compiler_params=pltpu.CompilerParams(
            dimension_semantics=("parallel", "arbitrary"),
            vmem_limit_bytes=_vmem_limit_bytes()),
        cost_estimate=cost,
    )(xp, params["ln_g"], params["ln_b"], wd, bd, wu, params["bu"],
      w1, b1, w2, params["b2"])

    return out[:M] if Mp != M else out


def init_params(key, d_model, bottleneck, hidden, dtype=jnp.float32):
    k1, k2, k3 = jax.random.split(key, 3)
    # down_proj: kaiming_uniform_(a=sqrt(5)) on weight of shape (bottleneck, d_model)
    # -> bound = sqrt(6 / ((1 + a^2) * fan_in)) = sqrt(1 / d_model)
    bound = math.sqrt(1.0 / d_model)
    wd = jax.random.uniform(k1, (d_model, bottleneck), jnp.float32, -bound, bound)
    params = {
        "ln_g": jnp.ones((1, d_model), jnp.float32),
        "ln_b": jnp.zeros((1, d_model), jnp.float32),
        "wd": wd,
        "bd": jnp.zeros((1, bottleneck), jnp.float32),
        "wu": jnp.zeros((bottleneck, d_model), jnp.float32),   # zero-init per module
        "bu": jnp.zeros((1, d_model), jnp.float32),
        # synthetic mlp (the `mlp` module passed into Adapter.__init__):
        "w1": jax.random.normal(k2, (d_model, hidden), jnp.float32) * 0.02,
        "b1": jnp.zeros((1, hidden), jnp.float32),
        "w2": jax.random.normal(k3, (hidden, d_model), jnp.float32) * 0.02,
        "b2": jnp.zeros((1, d_model), jnp.float32),
    }
    # bf16 storage halves HBM/VMEM traffic; accumulation in-kernel stays f32.
    return {k: v.astype(dtype) for k, v in params.items()}


if __name__ == "__main__":
    B, N, D = 2, 8, 128          # batch, seq, d_model
    BOTTLENECK, HIDDEN = 8, 256

    key = jax.random.PRNGKey(0)
    kx, kp, kw = jax.random.split(key, 3)
    x = jax.random.normal(kx, (B, N, D), jnp.float32)
    params = init_params(kp, D, BOTTLENECK, HIDDEN, dtype=jnp.float32)
    # The module zero-inits up_proj (so `up` would be identically zero); perturb it
    # here purely so the sanity check exercises the down/up path numerically.
    params["wu"] = 0.02 * jax.random.normal(kw, (BOTTLENECK, D), jnp.float32)

    x2d = x.reshape(B * N, D)    # layout: (M, D) tokens
    out = adapter_forward(x2d, params, scale=1.0)
    jax.block_until_ready(out)
    out = out.reshape(B, N, D)

    # sanity check against plain-JAX reference (exact erf-form GELU = torch default)
    def ref(x2d):
        from jax.scipy.special import erf
        h = x2d @ params["w1"] + params["b1"]
        h = 0.5 * h * (1.0 + erf(h / jnp.sqrt(2.0)))
        residual = h @ params["w2"] + params["b2"]
        mu = x2d.mean(-1, keepdims=True)
        var = ((x2d - mu) ** 2).mean(-1, keepdims=True)
        xn = (x2d - mu) / jnp.sqrt(var + 1e-5) * params["ln_g"] + params["ln_b"]
        down = jnp.maximum(xn @ params["wd"] + params["bd"], 0.0)
        up = (down @ params["wu"] + params["bu"]) * 1.0
        return up + residual

    expected = ref(x2d).reshape(B, N, D)
    err = float(jnp.max(jnp.abs(out - expected)))
    assert jnp.allclose(out, expected, atol=1e-4, rtol=1e-4), err
    print("KERNEL_OK")
</pallas_src>

<mosaic_0001>
module attributes {stable_mosaic.version = 11 : i64} {
  func.func @_adapter_kernel(%arg0: i32, %arg1: i32, %arg2: memref<8x128xf32, #tpu.memory_space<vmem>>, %arg3: memref<1x128xf32, #tpu.memory_space<vmem>>, %arg4: memref<1x128xf32, #tpu.memory_space<vmem>>, %arg5: memref<128x128xf32, #tpu.memory_space<vmem>>, %arg6: memref<1x128xf32, #tpu.memory_space<vmem>>, %arg7: memref<128x128xf32, #tpu.memory_space<vmem>>, %arg8: memref<1x128xf32, #tpu.memory_space<vmem>>, %arg9: memref<128x256xf32, #tpu.memory_space<vmem>>, %arg10: memref<1x256xf32, #tpu.memory_space<vmem>>, %arg11: memref<256x128xf32, #tpu.memory_space<vmem>>, %arg12: memref<1x128xf32, #tpu.memory_space<vmem>>, %arg13: memref<8x128xf32, #tpu.memory_space<vmem>>, %arg14: memref<8x128xf32, #tpu.memory_space<vmem>>) attributes {dimension_semantics = [#tpu.dimension_semantics<parallel>, #tpu.dimension_semantics<arbitrary>], iteration_bounds = array<i64: 2, 1>, scalar_prefetch = 0 : i64, scratch_operands = 1 : i64, tpu.core_type = #tpu.core_type<tc>, window_params = [{transform_indices = @transform_0, window_bounds = array<i64: 8, 128>}, {pipeline_mode = #tpu.pipeline_mode<synchronous>, transform_indices = @transform_1, window_bounds = array<i64: 1, 128>}, {pipeline_mode = #tpu.pipeline_mode<synchronous>, transform_indices = @transform_2, window_bounds = array<i64: 1, 128>}, {pipeline_mode = #tpu.pipeline_mode<synchronous>, transform_indices = @transform_3, window_bounds = array<i64: 128, 128>}, {pipeline_mode = #tpu.pipeline_mode<synchronous>, transform_indices = @transform_4, window_bounds = array<i64: 1, 128>}, {pipeline_mode = #tpu.pipeline_mode<synchronous>, transform_indices = @transform_5, window_bounds = array<i64: 128, 128>}, {pipeline_mode = #tpu.pipeline_mode<synchronous>, transform_indices = @transform_6, window_bounds = array<i64: 1, 128>}, {transform_indices = @transform_7, window_bounds = array<i64: 128, 256>}, {transform_indices = @transform_8, window_bounds = array<i64: 1, 256>}, {transform_indices = @transform_9, window_bounds = array<i64: 256, 128>}, {pipeline_mode = #tpu.pipeline_mode<synchronous>, transform_indices = @transform_10, window_bounds = array<i64: 1, 128>}, {transform_indices = @transform_11, window_bounds = array<i64: 8, 128>}]} {
    %c0_i32 = arith.constant 0 : i32
    %0 = arith.cmpi eq, %arg1, %c0_i32 : i32
    %1 = arith.extui %0 : i1 to i32
    %c0_i32_0 = arith.constant 0 : i32
    %2 = arith.cmpi ne, %1, %c0_i32_0 : i32
    scf.if %2 {
      %cst_29 = arith.constant 0.000000e+00 : f32
      %56 = vector.broadcast %cst_29 : f32 to vector<8x128xf32>
      %c0_30 = arith.constant 0 : index
      %c0_31 = arith.constant 0 : index
      %57 = vector.load %arg14[%c0_30, %c0_31] : memref<8x128xf32, #tpu.memory_space<vmem>>, vector<8x128xf32>
      tpu.vector_store %arg14[%c0_30, %c0_31], %56 {strides = array<i32>} : memref<8x128xf32, #tpu.memory_space<vmem>>, vector<8x128xf32>,
    } else {
    }
    %c0 = arith.constant 0 : index
    %c0_1 = arith.constant 0 : index
    %3 = vector.load %arg2[%c0, %c0_1] : memref<8x128xf32, #tpu.memory_space<vmem>>, vector<8x128xf32>
    %c0_2 = arith.constant 0 : index
    %c0_3 = arith.constant 0 : index
    %4 = vector.load %arg9[%c0_2, %c0_3] : memref<128x256xf32, #tpu.memory_space<vmem>>, vector<128x256xf32>
    %cst = arith.constant dense<0.000000e+00> : vector<8x256xf32>
    %5 = tpu.matmul %3, %4, %cst {dimension_numbers = #tpu.dot_dimension_numbers<[1], [0], [0], [1], [0, 0, 1, 1], [], []>} : vector<8x128xf32>, vector<128x256xf32>, vector<8x256xf32> -> vector<8x256xf32>
    %c0_4 = arith.constant 0 : index
    %c0_5 = arith.constant 0 : index
    %6 = vector.load %arg10[%c0_4, %c0_5] : memref<1x256xf32, #tpu.memory_space<vmem>>, vector<1x256xf32>
    %7 = vector.broadcast %6 : vector<1x256xf32> to vector<8x256xf32>
    %8 = arith.addf %5, %7 : vector<8x256xf32>
    %cst_6 = arith.constant 5.000000e-01 : f32
    %9 = vector.broadcast %cst_6 : f32 to vector<8x256xf32>
    %10 = arith.mulf %9, %8 : vector<8x256xf32>
    %cst_7 = arith.constant 0.707106769 : f32
    %11 = vector.broadcast %cst_7 : f32 to vector<8x256xf32>
    %12 = arith.mulf %8, %11 : vector<8x256xf32>
    %13 = math.absf %12 : vector<8x256xf32>
    %cst_8 = arith.constant 0.327591091 : f32
    %14 = vector.broadcast %cst_8 : f32 to vector<8x256xf32>
    %15 = arith.mulf %14, %13 : vector<8x256xf32>
    %cst_9 = arith.constant 1.000000e+00 : f32
    %16 = vector.broadcast %cst_9 : f32 to vector<8x256xf32>
    %17 = arith.addf %16, %15 : vector<8x256xf32>
    %18 = tpu.reciprocal %17 : vector<8x256xf32> -> vector<8x256xf32>
    %cst_10 = arith.constant 1.06140542 : f32
    %19 = vector.broadcast %cst_10 : f32 to vector<8x256xf32>
    %20 = arith.mulf %19, %18 : vector<8x256xf32>
    %cst_11 = arith.constant -1.45315206 : f32
    %21 = vector.broadcast %cst_11 : f32 to vector<8x256xf32>
    %22 = arith.addf %20, %21 : vector<8x256xf32>
    %23 = arith.mulf %22, %18 : vector<8x256xf32>
    %cst_12 = arith.constant 1.42141378 : f32
    %24 = vector.broadcast %cst_12 : f32 to vector<8x256xf32>
    %25 = arith.addf %23, %24 : vector<8x256xf32>
    %26 = arith.mulf %25, %18 : vector<8x256xf32>
    %cst_13 = arith.constant -0.284496725 : f32
    %27 = vector.broadcast %cst_13 : f32 to vector<8x256xf32>
    %28 = arith.addf %26, %27 : vector<8x256xf32>
    %29 = arith.mulf %28, %18 : vector<8x256xf32>
    %cst_14 = arith.constant 0.254829586 : f32
    %30 = vector.broadcast %cst_14 : f32 to vector<8x256xf32>
    %31 = arith.addf %29, %30 : vector<8x256xf32>
    %32 = arith.mulf %31, %18 : vector<8x256xf32>
    %cst_15 = arith.constant 0.000000e+00 : f32
    %33 = vector.broadcast %cst_15 : f32 to vector<8x256xf32>
    %34 = arith.subf %33, %13 : vector<8x256xf32>
    %35 = arith.mulf %34, %13 : vector<8x256xf32>
    %36 = math.exp %35 : vector<8x256xf32>
    %37 = arith.mulf %32, %36 : vector<8x256xf32>
    %cst_16 = arith.constant 1.000000e+00 : f32
    %38 = vector.broadcast %cst_16 : f32 to vector<8x256xf32>
    %39 = arith.subf %38, %37 : vector<8x256xf32>
    %cst_17 = arith.constant 0.000000e+00 : f32
    %40 = vector.broadcast %cst_17 : f32 to vector<8x256xf32>
    %41 = arith.cmpf oge, %12, %40 : vector<8x256xf32>
    %cst_18 = arith.constant 0.000000e+00 : f32
    %42 = vector.broadcast %cst_18 : f32 to vector<8x256xf32>
    %43 = arith.subf %42, %39 : vector<8x256xf32>
    %44 = arith.select %41, %39, %43 : vector<8x256xi1>, vector<8x256xf32>
    %cst_19 = arith.constant 1.000000e+00 : f32
    %45 = vector.broadcast %cst_19 : f32 to vector<8x256xf32>
    %46 = arith.addf %45, %44 : vector<8x256xf32>
    %47 = arith.mulf %10, %46 : vector<8x256xf32>
    %c0_20 = arith.constant 0 : index
    %c0_21 = arith.constant 0 : index
    %48 = vector.load %arg14[%c0_20, %c0_21] : memref<8x128xf32, #tpu.memory_space<vmem>>, vector<8x128xf32>
    %c0_22 = arith.constant 0 : index
    %c0_23 = arith.constant 0 : index
    %49 = vector.load %arg11[%c0_22, %c0_23] : memref<256x128xf32, #tpu.memory_space<vmem>>, vector<256x128xf32>
    %cst_24 = arith.constant dense<0.000000e+00> : vector<8x128xf32>
    %50 = tpu.matmul %47, %49, %cst_24 {dimension_numbers = #tpu.dot_dimension_numbers<[1], [0], [0], [1], [0, 0, 1, 1], [], []>} : vector<8x256xf32>, vector<256x128xf32>, vector<8x128xf32> -> vector<8x128xf32>
    %51 = arith.addf %48, %50 : vector<8x128xf32>
    %c0_25 = arith.constant 0 : index
    %c0_26 = arith.constant 0 : index
    %52 = vector.load %arg14[%c0_25, %c0_26] : memref<8x128xf32, #tpu.memory_space<vmem>>, vector<8x128xf32>
    tpu.vector_store %arg14[%c0_25, %c0_26], %51 {strides = array<i32>} : memref<8x128xf32, #tpu.memory_space<vmem>>, vector<8x128xf32>,
    %c0_i32_27 = arith.constant 0 : i32
    %53 = arith.cmpi eq, %arg1, %c0_i32_27 : i32
    %54 = arith.extui %53 : i1 to i32
    %c0_i32_28 = arith.constant 0 : i32
    %55 = arith.cmpi ne, %54, %c0_i32_28 : i32
    scf.if %55 {
      %c0_29 = arith.constant 0 : index
      %c0_30 = arith.constant 0 : index
      %56 = vector.load %arg14[%c0_29, %c0_30] : memref<8x128xf32, #tpu.memory_space<vmem>>, vector<8x128xf32>
      %c0_31 = arith.constant 0 : index
      %c0_32 = arith.constant 0 : index
      %57 = vector.load %arg12[%c0_31, %c0_32] : memref<1x128xf32, #tpu.memory_space<vmem>>, vector<1x128xf32>
      %58 = vector.broadcast %57 : vector<1x128xf32> to vector<8x128xf32>
      %59 = arith.addf %56, %58 : vector<8x128xf32>
      %cst_33 = arith.constant dense<0.000000e+00> : vector<8xf32>
      %60 = vector.multi_reduction <add>, %3, %cst_33 [1] : vector<8x128xf32> to vector<8xf32>
      %61 = vector.shape_cast %60 : vector<8xf32> to vector<8x1xf32>
      %cst_34 = arith.constant 1.280000e+02 : f32
      %62 = vector.broadcast %cst_34 : f32 to vector<8x1xf32>
      %63 = arith.divf %61, %62 : vector<8x1xf32>
      %64 = vector.broadcast %63 : vector<8x1xf32> to vector<8x128xf32>
      %65 = arith.subf %3, %64 : vector<8x128xf32>
      %66 = arith.mulf %65, %65 : vector<8x128xf32>
      %cst_35 = arith.constant dense<0.000000e+00> : vector<8xf32>
      %67 = vector.multi_reduction <add>, %66, %cst_35 [1] : vector<8x128xf32> to vector<8xf32>
      %68 = vector.shape_cast %67 : vector<8xf32> to vector<8x1xf32>
      %cst_36 = arith.constant 1.280000e+02 : f32
      %69 = vector.broadcast %cst_36 : f32 to vector<8x1xf32>
      %70 = arith.divf %68, %69 : vector<8x1xf32>
      %71 = vector.broadcast %63 : vector<8x1xf32> to vector<8x128xf32>
      %72 = arith.subf %3, %71 : vector<8x128xf32>
      %cst_37 = arith.constant 9.99999974E-6 : f32
      %73 = vector.broadcast %cst_37 : f32 to vector<8x1xf32>
      %74 = arith.addf %70, %73 : vector<8x1xf32>
      %75 = math.rsqrt %74 : vector<8x1xf32>
      %76 = vector.broadcast %75 : vector<8x1xf32> to vector<8x128xf32>
      %77 = arith.mulf %72, %76 : vector<8x128xf32>
      %c0_38 = arith.constant 0 : index
      %c0_39 = arith.constant 0 : index
      %78 = vector.load %arg3[%c0_38, %c0_39] : memref<1x128xf32, #tpu.memory_space<vmem>>, vector<1x128xf32>
      %79 = vector.broadcast %78 : vector<1x128xf32> to vector<8x128xf32>
      %80 = arith.mulf %77, %79 : vector<8x128xf32>
      %c0_40 = arith.constant 0 : index
      %c0_41 = arith.constant 0 : index
      %81 = vector.load %arg4[%c0_40, %c0_41] : memref<1x128xf32, #tpu.memory_space<vmem>>, vector<1x128xf32>
      %82 = vector.broadcast %81 : vector<1x128xf32> to vector<8x128xf32>
      %83 = arith.addf %80, %82 : vector<8x128xf32>
      %c0_42 = arith.constant 0 : index
      %c0_43 = arith.constant 0 : index
      %84 = vector.load %arg5[%c0_42, %c0_43] : memref<128x128xf32, #tpu.memory_space<vmem>>, vector<128x128xf32>
      %cst_44 = arith.constant dense<0.000000e+00> : vector<8x128xf32>
      %85 = tpu.matmul %83, %84, %cst_44 {dimension_numbers = #tpu.dot_dimension_numbers<[1], [0], [0], [1], [0, 0, 1, 1], [], []>} : vector<8x128xf32>, vector<128x128xf32>, vector<8x128xf32> -> vector<8x128xf32>
      %c0_45 = arith.constant 0 : index
      %c0_46 = arith.constant 0 : index
      %86 = vector.load %arg6[%c0_45, %c0_46] : memref<1x128xf32, #tpu.memory_space<vmem>>, vector<1x128xf32>
      %87 = vector.broadcast %86 : vector<1x128xf32> to vector<8x128xf32>
      %88 = arith.addf %85, %87 : vector<8x128xf32>
      %cst_47 = arith.constant 0.000000e+00 : f32
      %89 = vector.broadcast %cst_47 : f32 to vector<8x128xf32>
      %90 = arith.maximumf %88, %89 : vector<8x128xf32>
      %c0_48 = arith.constant 0 : index
      %c0_49 = arith.constant 0 : index
      %91 = vector.load %arg7[%c0_48, %c0_49] : memref<128x128xf32, #tpu.memory_space<vmem>>, vector<128x128xf32>
      %cst_50 = arith.constant dense<0.000000e+00> : vector<8x128xf32>
      %92 = tpu.matmul %90, %91, %cst_50 {dimension_numbers = #tpu.dot_dimension_numbers<[1], [0], [0], [1], [0, 0, 1, 1], [], []>} : vector<8x128xf32>, vector<128x128xf32>, vector<8x128xf32> -> vector<8x128xf32>
      %c0_51 = arith.constant 0 : index
      %c0_52 = arith.constant 0 : index
      %93 = vector.load %arg8[%c0_51, %c0_52] : memref<1x128xf32, #tpu.memory_space<vmem>>, vector<1x128xf32>
      %94 = vector.broadcast %93 : vector<1x128xf32> to vector<8x128xf32>
      %95 = arith.addf %92, %94 : vector<8x128xf32>
      %96 = arith.addf %95, %59 : vector<8x128xf32>
      %c0_53 = arith.constant 0 : index
      %c0_54 = arith.constant 0 : index
      %97 = vector.load %arg13[%c0_53, %c0_54] : memref<8x128xf32, #tpu.memory_space<vmem>>, vector<8x128xf32>
      tpu.vector_store %arg13[%c0_53, %c0_54], %96 {strides = array<i32>} : memref<8x128xf32, #tpu.memory_space<vmem>>, vector<8x128xf32>,
    } else {
    }
    return
  }
  func.func @transform_0(%arg0: i32, %arg1: i32) -> (i32, i32) {
    %c0_i32 = arith.constant 0 : i32
    %c0_i32_0 = arith.constant 0 : i32
    return %arg0, %c0_i32 : i32, i32
  }
  func.func @transform_1(%arg0: i32, %arg1: i32) -> (i32, i32) {
    %c0_i32 = arith.constant 0 : i32
    %c0_i32_0 = arith.constant 0 : i32
    %c0_i32_1 = arith.constant 0 : i32
    return %c0_i32, %c0_i32_0 : i32, i32
  }
  func.func @transform_2(%arg0: i32, %arg1: i32) -> (i32, i32) {
    %c0_i32 = arith.constant 0 : i32
    %c0_i32_0 = arith.constant 0 : i32
    %c0_i32_1 = arith.constant 0 : i32
    return %c0_i32, %c0_i32_0 : i32, i32
  }
  func.func @transform_3(%arg0: i32, %arg1: i32) -> (i32, i32) {
    %c0_i32 = arith.constant 0 : i32
    %c0_i32_0 = arith.constant 0 : i32
    %c0_i32_1 = arith.constant 0 : i32
    return %c0_i32, %c0_i32_0 : i32, i32
  }
  func.func @transform_4(%arg0: i32, %arg1: i32) -> (i32, i32) {
    %c0_i32 = arith.constant 0 : i32
    %c0_i32_0 = arith.constant 0 : i32
    %c0_i32_1 = arith.constant 0 : i32
    return %c0_i32, %c0_i32_0 : i32, i32
  }
  func.func @transform_5(%arg0: i32, %arg1: i32) -> (i32, i32) {
    %c0_i32 = arith.constant 0 : i32
    %c0_i32_0 = arith.constant 0 : i32
    %c0_i32_1 = arith.constant 0 : i32
    return %c0_i32, %c0_i32_0 : i32, i32
  }
  func.func @transform_6(%arg0: i32, %arg1: i32) -> (i32, i32) {
    %c0_i32 = arith.constant 0 : i32
    %c0_i32_0 = arith.constant 0 : i32
    %c0_i32_1 = arith.constant 0 : i32
    return %c0_i32, %c0_i32_0 : i32, i32
  }
  func.func @transform_7(%arg0: i32, %arg1: i32) -> (i32, i32) {
    %c0_i32 = arith.constant 0 : i32
    %c0_i32_0 = arith.constant 0 : i32
    return %c0_i32, %arg1 : i32, i32
  }
  func.func @transform_8(%arg0: i32, %arg1: i32) -> (i32, i32) {
    %c0_i32 = arith.constant 0 : i32
    %c0_i32_0 = arith.constant 0 : i32
    return %c0_i32, %arg1 : i32, i32
  }
  func.func @transform_9(%arg0: i32, %arg1: i32) -> (i32, i32) {
    %c0_i32 = arith.constant 0 : i32
    %c0_i32_0 = arith.constant 0 : i32
    return %arg1, %c0_i32 : i32, i32
  }
  func.func @transform_10(%arg0: i32, %arg1: i32) -> (i32, i32) {
    %c0_i32 = arith.constant 0 : i32
    %c0_i32_0 = arith.constant 0 : i32
    %c0_i32_1 = arith.constant 0 : i32
    return %c0_i32, %c0_i32_0 : i32, i32
  }
  func.func @transform_11(%arg0: i32, %arg1: i32) -> (i32, i32) {
    %c0_i32 = arith.constant 0 : i32
    %c0_i32_0 = arith.constant 0 : i32
    return %arg0, %c0_i32 : i32, i32
  }
}

</mosaic_0001>

<bundles_post_ra>
// kernel: tpu_custom_call.1
= control target key start
LH: loop header
LB: loop body
LE: loop exit
PB: predicated region body
PF: predicated region fallthrough
CT: control target
= control target key end

     0   :  { %s2236_s0 = inlined_call_operand.hbm [shape: f32[16,128], index: 0, kind: input, shape index: {}]   ;;  %s2237_s1 = inlined_call_operand.vmem [shape: f32[1,128], index: 1, kind: input, shape index: {}]   ;;  %s2238_s2 = inlined_call_operand.vmem [shape: f32[1,128], index: 2, kind: input, shape index: {}]   ;;  %s2239_s3 = inlined_call_operand.hbm [shape: f32[128,128], index: 3, kind: input, shape index: {}]   ;;  %s2240_s4 = inlined_call_operand.vmem [shape: f32[1,128], index: 4, kind: input, shape index: {}]   ;;  %s2241_s5 = inlined_call_operand.hbm [shape: f32[128,128], index: 5, kind: input, shape index: {}]   ;;  %s2242_s6 = inlined_call_operand.vmem [shape: f32[1,128], index: 6, kind: input, shape index: {}]   ;;  %s2243_s7 = inlined_call_operand.hbm [shape: f32[128,256], index: 7, kind: input, shape index: {}]   ;;  %s2244_s8 = inlined_call_operand.vmem [shape: f32[1,256], index: 8, kind: input, shape index: {}]   ;;  %s2245_s9 = inlined_call_operand.hbm [shape: f32[256,128], index: 9, kind: input, shape index: {}]   ;;  %s2246_s10 = inlined_call_operand.vmem [shape: f32[1,128], index: 10, kind: input, shape index: {}]   ;;  %s2247_s11 = inlined_call_operand.hbm [shape: f32[16,128], index: 11, kind: output, shape index: {}]  }
   0x1   :  { %2258 = sst [smem:[#allocation17_spill]] %s2239_s3 }
   0x2   :  { %2259 = sst [smem:[#allocation18_spill]] %s2240_s4 }
   0x3   :  { %2260 = sst [smem:[#allocation19_spill]] %s2241_s5 }
   0x4   :  { %2261 = sst [smem:[#allocation20_spill]] %s2242_s6 }
   0x5   :  { %2262 = sst [smem:[#allocation21_spill]] %s2246_s10 }
   0x6   :  { %2263 = sst [smem:[#allocation22_spill]] %s2247_s11 }
   0x7   :  { %16 = vsyncpa [#allocation4], 0 }
   0x8   :  { %18 = vsyncpa [#allocation4 + $0x1], 0 }
   0x9   :  { %19 = vsyncpa [#allocation7], 0 }
   0xa   :  { %20 = vsyncpa [#allocation10], 0 }
   0xb   :  { %21 = vsyncpa [#allocation5], 0 }
   0xc   :  { %23 = vsyncpa [#allocation5 + $0x1], 0  ;;  %s1867_s17 = smov 0   ;;  %s1869_s18 = smov 0  }
   0xd   :  { %s1871_s19 = smov 0   ;;  %s1873_s20 = smov 0  }
   0xe   :  { %s1875_s21 = smov 0   ;;  %s1877_s22 = smov 0  }
   0xf LB: > { %s2248_s23 = sadd.s32 4294967295, %s1792_s22   ;;  %p1164_p0 = scmp.ge.s32.totalorder %s1792_s22, 1  ;;  %s1792_s22 = sphi %s1877_s22, %s29_s22   ;;  %s1788_s21 = sphi %s1875_s21, %s2292_s21   ;;  %s1784_s20 = sphi %s1873_s20, %s2291_s20   ;;  %s1780_s19 = sphi %s1871_s19, %s2290_s19   ;;  %s1776_s18 = sphi %s1869_s18, %s2289_s18   ;;  %s1772_s17 = sphi %s1867_s17, %s2288_s17  }
  0x10   : > { %p1901_p1 = scmp.eq.s32.totalorder %s2248_s23, 0  ;;  %p323_p2 = scmp.lt.s32.totalorder %s1792_s22, 3 }
  0x11   : > { %s1794_s26 = smov [#allocation6]   ;;  %s1795_s29 = smov [#allocation9]  }
  0x12   : > { %s2264_s24 = scalar_select %p1901_p1, 1, 0 }
  0x13   : > { %p1906_p3 = pnand %p1164_p0, %p323_p2  ;;  %s341_s27 = sshll.u32 %s1794_s26, 4  ;;  %s1910_s27 = int_to_ptr.vmem [resolvable:$true] %s341_s27 }
  0x14   : > { %s376_s30 = sshll.u32 %s1795_s29, 4  ;;  %s2267_s3 = sld [smem:[#allocation17_spill]]  ;;  %s1921_s30 = int_to_ptr.vmem [resolvable:$true] %s376_s30 }
  0x15   : > { %s2265_s25 = scalar_select %p1906_p3, 1, 0 }
  0x16   : > { %p1460_p4 = pneg %p1906_p3 }
  0x18   : > { %p1917_p6 = pnand %p1460_p4, %p1901_p1 }
  0x1a   : > { %s1560_s14 = scalar_lea.hbm %s2267_s3, 2048  ;;  %p1931_p8 = pneg %p1917_p6 }
  0x1b   : > { %p1561_p7 = scmp.ne.s32.totalorder %s2267_s3, %s1560_s14  ;;  %p1567_p11 = scmp.lt.u32.totalorder %s1560_s14, %s2267_s3 }
  0x1d   : > { %p1563_p9 = pnand %p1931_p8, %p1561_p7 }
  0x1f   : > { %p1564_p10 = pneg %p1563_p9 }
  0x21   : > { %p1569_p12 = pnand %p1567_p11, %p1564_p10 }
  0x23   : > { %1572 = shalt.err (!%p1569_p12)
}
  0x24   : > { %s1573_s12 = scalar_lea.vmem %s1910_s27, 2048  ;;  %p1581_p4 = scmp.lt.s32.totalorder %s1910_s27, %s1910_s27 }
  0x25   : > { %p1574_p13 = scmp.ne.s32.totalorder %s1910_s27, %s1573_s12  ;;  %p1582_p5 = scmp.lt.s32.totalorder %s1573_s12, %s1573_s12 }
  0x27   : > { %p1576_p0 = pnand %p1574_p13, %p1931_p8  ;;  %p1583_p7 = por %p1582_p5, %p1581_p4 }
  0x29   : > { %p1577_p2 = pneg %p1576_p0 }
  0x2b   : > { %p1584_p9 = pnand %p1583_p7, %p1577_p2 }
  0x2d   : > { %1587 = shalt.err (!%p1584_p9)
}
  0x2e   : > { %s2250_s13 = smov 128   ;;  %s2252_s23 = smov 8  }
  0x2f   : > { %1463 = dma.hbm_to_vmem [thread:$0]  (!%p1917_p6), %s2267_s3, 2048, %s1910_s27, [#allocation7], %s2250_s13, %s2250_s13, %s2252_s23  }
  0x30   : > { %s1588_s12 = scalar_lea.hbm %s2243_s7, 4096 }
  0x31   : > { %p1589_p5 = scmp.ne.s32.totalorder %s2243_s7, %s1588_s12  ;;  %p1595_p12 = scmp.lt.u32.totalorder %s1588_s12, %s2243_s7 }
  0x33   : > { %p1591_p10 = pnand %p1589_p5, %p1931_p8 }
  0x35   : > { %p1592_p11 = pneg %p1591_p10 }
  0x37   : > { %p1597_p13 = pnand %p1595_p12, %p1592_p11 }
  0x39   : > { %1600 = shalt.err (!%p1597_p13)
}
  0x3a   : > { %s1601_s27 = scalar_lea.vmem %s1921_s30, 4096  ;;  %p1609_p7 = scmp.lt.s32.totalorder %s1921_s30, %s1921_s30 }
  0x3b   : > { %p1602_p0 = scmp.ne.s32.totalorder %s1921_s30, %s1601_s27  ;;  %p1610_p9 = scmp.lt.s32.totalorder %s1601_s27, %s1601_s27 }
  0x3d   : > { %p1604_p2 = pnand %p1602_p0, %p1931_p8  ;;  %p1611_p5 = por %p1610_p9, %p1609_p7 }
  0x3f   : > { %p1605_p4 = pneg %p1604_p2 }
  0x41   : > { %p1612_p10 = pnand %p1611_p5, %p1605_p4 }
  0x43   : > { %1615 = shalt.err (!%p1612_p10)
}
  0x44   : > { %s1798_s6 = smov 256   ;;  %s1799_s4 = smov 16  }
  0x45   : > { %1469 = dma.hbm_to_vmem [thread:$0]  (!%p1917_p6), %s2243_s7, 4096, %s1921_s30, [#allocation10], %s1798_s6, %s1798_s6, %s1799_s4  }
  0x46   : > { %s1800_s14 = smov [#allocation8]   ;;  %s1801_s16 = smov [#allocation11]  }
  0x47   : > { %s357_s15 = sshll.u32 %s1800_s14, 4  ;;  %s400_s29 = sshll.u32 %s1801_s16, 4  ;;  %s358_s15 = int_to_ptr.vmem [resolvable:$true] %s357_s15  ;;  %s1978_s29 = int_to_ptr.vmem [resolvable:$true] %s400_s29 }
  0x48   : > { %s2269_s5 = sld [smem:[#allocation19_spill]] }
  0x4e   : > { %s1616_s13 = scalar_lea.hbm %s2269_s5, 2048 }
  0x4f   : > { %p1617_p11 = scmp.ne.s32.totalorder %s2269_s5, %s1616_s13  ;;  %p1623_p0 = scmp.lt.u32.totalorder %s1616_s13, %s2269_s5 }
  0x51   : > { %p1619_p12 = pnand %p1617_p11, %p1931_p8 }
  0x53   : > { %p1620_p13 = pneg %p1619_p12 }
  0x55   : > { %p1625_p2 = pnand %p1623_p0, %p1620_p13 }
  0x57   : > { %1628 = shalt.err (!%p1625_p2)
}
  0x58   : > { %s1629_s6 = scalar_lea.vmem %s358_s15, 2048  ;;  %p1637_p5 = scmp.lt.s32.totalorder %s358_s15, %s358_s15 }
  0x59   : > { %p1630_p4 = scmp.ne.s32.totalorder %s358_s15, %s1629_s6  ;;  %p1638_p10 = scmp.lt.s32.totalorder %s1629_s6, %s1629_s6 }
  0x5b   : > { %p1632_p7 = pnand %p1630_p4, %p1931_p8  ;;  %p1639_p3 = por %p1638_p10, %p1637_p5 }
  0x5d   : > { %p1633_p9 = pneg %p1632_p7 }
  0x5f   : > { %p1640_p1 = pnand %p1639_p3, %p1633_p9 }
  0x61   : > { %1643 = shalt.err (!%p1640_p1)
}
  0x62   : > { %s2270_s3 = smov 8   ;;  %s2271_s23 = smov 128  }
  0x63   : > { %1466 = dma.hbm_to_vmem [thread:$0]  (!%p1917_p6), %s2269_s5, 2048, %s358_s15, [#allocation7], %s2271_s23, %s2271_s23, %s2270_s3  }
  0x64   : > { %s1644_s16 = scalar_lea.hbm %s2245_s9, 4096 }
  0x65   : > { %p1645_p11 = scmp.ne.s32.totalorder %s2245_s9, %s1644_s16  ;;  %p1651_p12 = scmp.lt.u32.totalorder %s1644_s16, %s2245_s9 }
  0x67   : > { %p1647_p1 = pnand %p1645_p11, %p1931_p8 }
  0x69   : > { %p1648_p3 = pneg %p1647_p1 }
  0x6b   : > { %p1653_p13 = pnand %p1651_p12, %p1648_p3 }
  0x6d   : > { %1656 = shalt.err (!%p1653_p13)
}
  0x6e   : > { %s1657_s15 = scalar_lea.vmem %s1978_s29, 4096  ;;  %p1665_p7 = scmp.lt.s32.totalorder %s1978_s29, %s1978_s29 }
  0x6f   : > { %p1658_p0 = scmp.ne.s32.totalorder %s1978_s29, %s1657_s15  ;;  %p1666_p9 = scmp.lt.s32.totalorder %s1657_s15, %s1657_s15 }
  0x71   : > { %p1660_p2 = pnand %p1658_p0, %p1931_p8  ;;  %p1667_p5 = por %p1666_p9, %p1665_p7 }
  0x73   : > { %p1661_p4 = pneg %p1660_p2 }
  0x75   : > { %p1668_p10 = pnand %p1667_p5, %p1661_p4 }
  0x77   : > { %1671 = shalt.err (!%p1668_p10)
}
  0x78   : > { %1472 = dma.hbm_to_vmem [thread:$0]  (!%p1917_p6), %s2245_s9, 4096, %s1978_s29, [#allocation10], %s2271_s23, %s2271_s23, %s2270_s3  }
  0x79   : > { %s1163_s28 = sadd.s32 4294967294, %s1792_s22   ;;  %s41_s26 = sadd.s32 1, %s1788_s21 }
  0x7a   : > { %p43_p8 = scmp.ge.s32.totalorder %s41_s26, 2  ;;  %s48_s13 = sadd.s32 1, %s1780_s19 }
  0x7b   : > { %p55_p11 = scmp.ne.s32.totalorder %s1780_s19, %s1776_s18  ;;  %p56_p1 = scmp.eq.s32.totalorder %s1792_s22, 0 }
  0x7c   : > { %s2294_s26 = smov (%p43_p8, %s41_s26), 0  ;;  %p61_p12 = scmp.ne.s32.totalorder %s1776_s18, %s1772_s17 }
  0x7d   : > { %p2035_p3 = por %p56_p1, %p55_p11  ;;  %s45_s29 = ssub.s32 %s1788_s21, %s2294_s26 }
  0x7e   : > { %s2273_s3 = sadd.s32 4294967295, %s1792_s22   ;;  %p46_p13 = scmp.eq.s32.totalorder %s45_s29, 0 }
  0x7f   : > { %p310_p6 = scmp.eq.s32.totalorder %s2273_s3, 1  ;;  %p2274_p0 = scmp.ne.s32.totalorder %s2264_s24, 0 }
  0x80   : > { %p316_p7 = scmp.eq.s32.totalorder %s1163_s28, 1  ;;  %p1485_p5 = scmp.lt.s32.totalorder %s1792_s22, 2 }
  0x81   : > { %p2047_p2 = por %p2274_p0, %p61_p12  ;;  %p2051_p4 = por %p310_p6, %p55_p11 }
  0x82   : > { %s2056_s16 = scalar_select %p46_p13, %s1780_s19, %s48_s13  }
  0x83   : > { %s2276_s14 = scalar_select %p2051_p4, 1, 0 }
  0x84   : > { %p2058_p9 = por %p316_p7, %p61_p12  ;;  %s417_s27 = sand.u32 1, %s1780_s19  }
  0x85   : > { %s1172_s10 = sshll.u32 %s1788_s21, 7  ;;  %s1171_s30 = sshll.u32 %s417_s27, 3 }
  0x86   : > { %s2277_s12 = scalar_select %p2058_p9, 1, 0 }
  0x87   : > { %s2068_s4 = scalar_lea.hbm %s2236_s0, %s1172_s10  ;;  %s421_s28 = scalar_lea.vmem [#allocation3], %s1171_s30 }
  0x88   : > { %s428_s13 = sshll.u32 %s421_s28, 4  ;;  %p2072_p10 = pnand %p1485_p5, %p2035_p3  ;;  %s2076_s13 = int_to_ptr.vmem [resolvable:$true] %s428_s13 }
  0x89   : > { %s418_s3 = scalar_lea.sflag [#allocation4], %s417_s27  ;;  %s1672_s5 = scalar_lea.hbm %s2068_s4, 128 }
  0x8a   : > { %p1673_p8 = scmp.ne.s32.totalorder %s2068_s4, %s1672_s5  ;;  %p1674_p11 = pneg %p2072_p10 }
  0x8b   : > { %s1677_s11 = scalar_lea.hbm %s2236_s0, 256  ;;  %p1678_p3 = scmp.lt.u32.totalorder %s2068_s4, %s2236_s0 }
  0x8c   : > { %p1675_p1 = pnand %p1674_p11, %p1673_p8  ;;  %p1679_p6 = scmp.lt.u32.totalorder %s1677_s11, %s1672_s5 }
  0x8d   : > { %p1681_p0 = scmp.lt.u32.totalorder %s1672_s5, %s2068_s4 }
  0x8e   : > { %p1676_p12 = pneg %p1675_p1  ;;  %p1680_p13 = por %p1679_p6, %p1678_p3 }
  0x90   : > { %p1682_p7 = por %p1681_p0, %p1680_p13 }
  0x92   : > { %p1683_p5 = pnand %p1682_p7, %p1676_p12 }
  0x94   : > { %1686 = shalt.err (!%p1683_p5)
}
  0x95   : > { %s1687_s27 = scalar_lea.vmem %s2076_s13, 128  ;;  %s1802_s28 = smov [#allocation3]  }
  0x96   : > { %p1688_p8 = scmp.ne.s32.totalorder %s2076_s13, %s1687_s27  ;;  %s1692_s10 = sshll.u32 %s1802_s28, 4  ;;  %s1693_s10 = int_to_ptr.vmem [resolvable:$false] %s1692_s10 }
  0x97   : > { %s1694_s30 = scalar_lea.vmem %s1693_s10, 256  ;;  %p1695_p4 = scmp.lt.s32.totalorder %s2076_s13, %s1693_s10 }
  0x98   : > { %p1690_p1 = pnand %p1688_p8, %p1674_p11  ;;  %p1696_p3 = scmp.lt.s32.totalorder %s1694_s30, %s1687_s27 }
  0x9a   : > { %p1691_p9 = pneg %p1690_p1  ;;  %p1697_p6 = por %p1696_p3, %p1695_p4 }
  0x9c   : > { %p1698_p13 = pnand %p1697_p6, %p1691_p9 }
  0x9e   : > { %1701 = shalt.err (!%p1698_p13)
}
  0x9f   : > { %1476 = dma.hbm_to_vmem [thread:$0]  (!%p2072_p10), %s2068_s4, 128, %s2076_s13, %s418_s3  }
  0xa0   : > { %p2279_p12 = scmp.ne.s32.totalorder %s2265_s25, 0 }
  0xa1   : > { %s2106_s5 = sand.u32 (!%p2279_p12), 1, %s1776_s18  }
  0xa2   : > { %437 = sbr.rel (%p2279_p12) target bundleno = 933 (0x3a5), region = 64  ;;  %s1174_s11 = sshll.u32 (!%p2279_p12), %s2106_s5, 3 }
  0xa3   : > { %s440_s15 = scalar_lea.sflag (!%p2279_p12), [#allocation4], %s2106_s5  ;;  %s443_s6 = scalar_lea.vmem (!%p2279_p12), [#allocation3], %s1174_s11 }
  0xa9   : > { %1755 = dma.done.wait (%p2047_p2), %s440_s15, 128  }
  0xaa   : > { %1757 = vsyncadd (%p2047_p2), %s440_s15, 4294967168  ;;  %p2280_p4 = scmp.ne.s32.totalorder %s2264_s24, 0 }
  0xac   : > { %1759 = dma.done.wait (%p2280_p4), [#allocation7], 4096  }
  0xad   : > { %1761 = vsyncadd (%p2280_p4), [#allocation7], 4294963200 }
  0xae   : > { %1763 = dma.done.wait (%p2280_p4), [#allocation10], 8192  }
  0xaf   : > { %1765 = vsyncadd (%p2280_p4), [#allocation10], 4294959104  ;;  %v2124_v0 = vld [vmem:[%s443_s6] sm:$0xff]  ;;  %v516_v1 = vld [vmem:[#allocation9 + $0x8] sm:$0xff]  ;;  %v1803_v8 = vmov 0.0   ;;  %v1804_v53 = vmov 0.0|0.0  }
  0xb0   : > { %799 = vadd.xlane.f32.xlu0 %v2124_v0  ;;  %v518_v2 = vld [vmem:[#allocation9 + $0x18] sm:$0xff]  ;;  %v515_v3 = vld [vmem:[#allocation9] sm:$0xff]  ;;  %v517_v5 = vld [vmem:[#allocation9 + $0x10] sm:$0xff]  ;;  %623 = vmatprep.mubr.f32.mxu0 %v1803_v8  ;;  %vm1805_vm0 = vmmov 0   ;;  %s2281_s28 = sld [smem:[#allocation18_spill]]  ;;  %s2282_s15 = sld [smem:[#allocation21_spill]] }
  0xb1   : > { %v1328_v4 = vpack.c.bf16 %v518_v2, %v516_v1  ;;  %v520_v6 = vld [vmem:[#allocation9 + $0x28] sm:$0xff]  ;;  %v522_v7 = vld [vmem:[#allocation9 + $0x38] sm:$0xff]  ;;  %v1330_v9 = vpack.c.bf16 %v517_v5, %v515_v3  ;;  %v519_v11 = vld [vmem:[#allocation9 + $0x20] sm:$0xff]  ;;  %s2283_s25 = sld [smem:[#allocation20_spill]]  ;;  %s1186_s23 = sshll.u32 %s1784_s20, 7 }
  0xb2   : > { %v1332_v10 = vpack.c.bf16 %v522_v7, %v520_v6  ;;  %v521_v12 = vld [vmem:[#allocation9 + $0x30] sm:$0xff]  ;;  %v524_v13 = vld [vmem:[#allocation9 + $0x48] sm:$0xff]  ;;  %v526_v14 = vld [vmem:[#allocation9 + $0x58] sm:$0xff]  ;;  %s501_s4 = scalar_lea.vmem [#allocation12], %s1174_s11  ;;  %s2284_s27 = sld [smem:[#allocation22_spill]] }
  0xb3   : > { %1329 = vmatprep.subr.bf16.mxu0 %v1328_v4  ;;  %v1334_v15 = vpack.c.bf16 %v521_v12, %v519_v11  ;;  %v1336_v16 = vpack.c.bf16 %v526_v14, %v524_v13  ;;  %v523_v17 = vld [vmem:[#allocation9 + $0x40] sm:$0xff]  ;;  %v525_v18 = vld [vmem:[#allocation9 + $0x50] sm:$0xff]  ;;  %v528_v19 = vld [vmem:[#allocation9 + $0x68] sm:$0xff]  ;;  %s1030_s13 = sshll.u32 %s501_s4, 4  ;;  %s1017_s10 = scalar_lea.sflag [#allocation5], %s2106_s5  ;;  %s2189_s13 = int_to_ptr.vmem [resolvable:$true] %s1030_s13 }
  0xb4   : > { %1331 = vmatpush1.bf16.msra.mxu0 %v1330_v9  ;;  %v530_v20 = vld [vmem:[#allocation9 + $0x78] sm:$0xff]  ;;  %v1338_v21 = vpack.c.bf16 %v525_v18, %v523_v17  ;;  %v527_v23 = vld [vmem:[#allocation9 + $0x60] sm:$0xff]  ;;  %v529_v24 = vld [vmem:[#allocation9 + $0x70] sm:$0xff]  ;;  %s1702_s20 = scalar_lea.vmem %s2189_s13, 128  ;;  %p2285_p9 = scmp.ne.s32.totalorder %s2276_s14, 0 }
  0xb5   : > { %1333 = vmatprep.subr.bf16.mxu0 %v1332_v10  ;;  %v1340_v22 = vpack.c.bf16 %v530_v20, %v528_v19  ;;  %v532_v25 = vld [vmem:[#allocation9 + $0x88] sm:$0xff]  ;;  %v534_v26 = vld [vmem:[#allocation9 + $0x98] sm:$0xff]  ;;  %v1342_v27 = vpack.c.bf16 %v529_v24, %v527_v23  ;;  %v531_v29 = vld [vmem:[#allocation9 + $0x80] sm:$0xff]  ;;  %p1703_p2 = scmp.ne.s32.totalorder %s2189_s13, %s1702_s20  ;;  %s1806_s11 = smov [#allocation12]  }
  0xb6   : > { %v1344_v28 = vpack.c.bf16 %v534_v26, %v532_v25  ;;  %v533_v30 = vld [vmem:[#allocation9 + $0x90] sm:$0xff]  ;;  %v536_v31 = vld [vmem:[#allocation9 + $0xa8] sm:$0xff]  ;;  %v538_v32 = vld [vmem:[#allocation9 + $0xb8] sm:$0xff]  ;;  %s1706_s30 = sshll.u32 %s1806_s11, 4  ;;  %s1707_s30 = int_to_ptr.vmem [resolvable:$false] %s1706_s30 }
  0xb7   : > { %v1346_v33 = vpack.c.bf16 %v533_v30, %v531_v29  ;;  %v1348_v34 = vpack.c.bf16 %v538_v32, %v536_v31  ;;  %v535_v35 = vld [vmem:[#allocation9 + $0xa0] sm:$0xff]  ;;  %v537_v36 = vld [vmem:[#allocation9 + $0xb0] sm:$0xff]  ;;  %v540_v37 = vld [vmem:[#allocation9 + $0xc8] sm:$0xff]  ;;  %p1704_p10 = pnand %p1703_p2, %p2285_p9  ;;  %p1709_p0 = scmp.lt.s32.totalorder %s2189_s13, %s1707_s30 }
  0xb8   : > { %1335 = vmatpush1.bf16.msra.mxu0 %v1334_v15  ;;  %v542_v38 = vld [vmem:[#allocation9 + $0xd8] sm:$0xff]  ;;  %v1350_v39 = vpack.c.bf16 %v537_v36, %v535_v35  ;;  %v539_v41 = vld [vmem:[#allocation9 + $0xc0] sm:$0xff]  ;;  %v541_v42 = vld [vmem:[#allocation9 + $0xd0] sm:$0xff] }
  0xb9   : > { %1337 = vmatprep.subr.bf16.mxu0 %v1336_v16  ;;  %v1352_v40 = vpack.c.bf16 %v542_v38, %v540_v37  ;;  %v544_v43 = vld [vmem:[#allocation9 + $0xe8] sm:$0xff]  ;;  %v546_v44 = vld [vmem:[#allocation9 + $0xf8] sm:$0xff]  ;;  %v1354_v45 = vpack.c.bf16 %v541_v42, %v539_v41  ;;  %v543_v47 = vld [vmem:[#allocation9 + $0xe0] sm:$0xff]  ;;  %p1705_p11 = pneg %p1704_p10 }
  0xba   : > { %v1356_v46 = vpack.c.bf16 %v546_v44, %v544_v43  ;;  %v545_v48 = vld [vmem:[#allocation9 + $0xf0] sm:$0xff]  ;;  %v827_v50 = vld [vmem:[#allocation6] sm:$0xff]  ;;  %v828_v51 = vld [vmem:[#allocation6 + $0x8] sm:$0xff] }
  0xbb   : > { %v1358_v49 = vpack.c.bf16 %v545_v48, %v543_v47  ;;  %v1393_v52 = vpack.c.bf16 %v828_v51, %v827_v50  ;;  %v829_v54 = vld [vmem:[#allocation6 + $0x10] sm:$0xff]  ;;  %v830_v55 = vld [vmem:[#allocation6 + $0x18] sm:$0xff]  ;;  %v831_v57 = vld [vmem:[#allocation6 + $0x20] sm:$0xff] }
  0xbc   : > { %1339 = vmatpush1.bf16.msra.mxu0 %v1338_v21  ;;  %v1396_v56 = vpack.c.bf16 %v830_v55, %v829_v54  ;;  %v832_v58 = vld [vmem:[#allocation6 + $0x28] sm:$0xff]  ;;  %v833_v1 = vld [vmem:[#allocation6 + $0x30] sm:$0xff]  ;;  %v834_v2 = vld [vmem:[#allocation6 + $0x38] sm:$0xff] }
  0xbd   : > { %1341 = vmatprep.subr.bf16.mxu0 %v1340_v22  ;;  %v1399_v59 = vpack.c.bf16 %v832_v58, %v831_v57  ;;  %v1402_v3 = vpack.c.bf16 %v834_v2, %v833_v1  ;;  %v835_v4 = vld [vmem:[#allocation6 + $0x40] sm:$0xff]  ;;  %v836_v5 = vld [vmem:[#allocation6 + $0x48] sm:$0xff]  ;;  %v837_v7 = vld [vmem:[#allocation6 + $0x50] sm:$0xff] }
  0xbe   : > { %v1405_v6 = vpack.c.bf16 %v836_v5, %v835_v4  ;;  %v838_v9 = vld [vmem:[#allocation6 + $0x58] sm:$0xff]  ;;  %v839_v10 = vld [vmem:[#allocation6 + $0x60] sm:$0xff]  ;;  %v840_v11 = vld [vmem:[#allocation6 + $0x68] sm:$0xff] }
  0xbf   : > { %v1411_v12 = vpack.c.bf16 %v840_v11, %v839_v10  ;;  %v841_v13 = vld [vmem:[#allocation6 + $0x70] sm:$0xff]  ;;  %v842_v14 = vld [vmem:[#allocation6 + $0x78] sm:$0xff]  ;;  %v699_v16 = vld [vmem:[#allocation11 + $0x80] sm:$0xff] }
  0xc0   : > { %1343 = vmatpush1.bf16.msra.mxu0 %v1342_v27  ;;  %v1414_v15 = vpack.c.bf16 %v842_v14, %v841_v13  ;;  %v700_v17 = vld [vmem:[#allocation11 + $0x88] sm:$0xff]  ;;  %v683_v19 = vld [vmem:[#allocation11] sm:$0xff]  ;;  %v701_v21 = vld [vmem:[#allocation11 + $0x90] sm:$0xff] }
  0xc1   : > { %1345 = vmatprep.subr.bf16.mxu0 %v1344_v28  ;;  %v1360_v18 = vpack.c.bf16 %v700_v17, %v699_v16  ;;  %v684_v20 = vld [vmem:[#allocation11 + $0x8] sm:$0xff]  ;;  %v702_v23 = vld [vmem:[#allocation11 + $0x98] sm:$0xff]  ;;  %v685_v24 = vld [vmem:[#allocation11 + $0x10] sm:$0xff] }
  0xc2   : > { %v1362_v22 = vpack.c.bf16 %v684_v20, %v683_v19  ;;  %v686_v25 = vld [vmem:[#allocation11 + $0x18] sm:$0xff]  ;;  %v1364_v26 = vpack.c.bf16 %v702_v23, %v701_v21  ;;  %v703_v27 = vld [vmem:[#allocation11 + $0xa0] sm:$0xff]  ;;  %v704_v28 = vld [vmem:[#allocation11 + $0xa8] sm:$0xff] }
  0xc3   : > { %1361 = vmatprep.subr.bf16.mxu1 %v1360_v18  ;;  %v1366_v29 = vpack.c.bf16 %v686_v25, %v685_v24  ;;  %v1368_v30 = vpack.c.bf16 %v704_v28, %v703_v27  ;;  %v687_v31 = vld [vmem:[#allocation11 + $0x20] sm:$0xff]  ;;  %v688_v32 = vld [vmem:[#allocation11 + $0x28] sm:$0xff]  ;;  %v689_v37 = vld [vmem:[#allocation11 + $0x30] sm:$0xff] }
  0xc4   : > { %1347 = vmatpush1.bf16.msra.mxu0 %v1346_v33  ;;  %1363 = vmatpush3.bf16.msra.mxu1 %v1362_v22  ;;  %v705_v33 = vld [vmem:[#allocation11 + $0xb0] sm:$0xff]  ;;  %v1370_v35 = vpack.c.bf16 %v688_v32, %v687_v31  ;;  %v690_v38 = vld [vmem:[#allocation11 + $0x38] sm:$0xff]  ;;  %v691_v43 = vld [vmem:[#allocation11 + $0x40] sm:$0xff] }
  0xc5   : > { %1349 = vmatprep.subr.bf16.mxu0 %v1348_v34  ;;  %1365 = vmatprep.subr.bf16.mxu1 %v1364_v26  ;;  %v706_v34 = vld [vmem:[#allocation11 + $0xb8] sm:$0xff]  ;;  %v1374_v41 = vpack.c.bf16 %v690_v38, %v689_v37  ;;  %v692_v44 = vld [vmem:[#allocation11 + $0x48] sm:$0xff]  ;;  %v711_v51 = vld [vmem:[#allocation11 + $0xe0] sm:$0xff] }
  0xc6   : > { %v1372_v36 = vpack.c.bf16 %v706_v34, %v705_v33  ;;  %v1378_v47 = vpack.c.bf16 %v692_v44, %v691_v43  ;;  %v694_v50 = vld [vmem:[#allocation11 + $0x58] sm:$0xff]  ;;  %v696_v57 = vld [vmem:[#allocation11 + $0x68] sm:$0xff]  ;;  %v713_v58 = vld [vmem:[#allocation11 + $0xf0] sm:$0xff] }
  0xc7   : > { %v698_v1 = vld [vmem:[#allocation11 + $0x78] sm:$0xff] }
  0xc8   : > { %1351 = vmatpush1.bf16.msra.mxu0 %v1350_v39  ;;  %1367 = vmatpush3.bf16.msra.mxu1 %v1366_v29  ;;  %v707_v39 = vld [vmem:[#allocation11 + $0xc0] sm:$0xff] }
  0xc9   : > { %1353 = vmatprep.subr.bf16.mxu0 %v1352_v40  ;;  %1369 = vmatprep.subr.bf16.mxu1 %v1368_v30  ;;  %v708_v40 = vld [vmem:[#allocation11 + $0xc8] sm:$0xff] }
  0xca   : > { %v1376_v42 = vpack.c.bf16 %v708_v40, %v707_v39 }
  0xcc   : > { %1355 = vmatpush1.bf16.msra.mxu0 %v1354_v45  ;;  %1371 = vmatpush3.bf16.msra.mxu1 %v1370_v35  ;;  %v709_v45 = vld [vmem:[#allocation11 + $0xd0] sm:$0xff] }
  0xcd   : > { %1357 = vmatprep.subr.bf16.mxu0 %v1356_v46  ;;  %1373 = vmatprep.subr.bf16.mxu1 %v1372_v36  ;;  %v710_v46 = vld [vmem:[#allocation11 + $0xd8] sm:$0xff] }
  0xce   : > { %v1380_v48 = vpack.c.bf16 %v710_v46, %v709_v45 }
  0xd0   : > { %1359 = vmatpush1.bf16.msra.mxu0 %v1358_v49  ;;  %1375 = vmatpush3.bf16.msra.mxu1 %v1374_v41  ;;  %v693_v49 = vld [vmem:[#allocation11 + $0x50] sm:$0xff] }
  0xd1   : > { %1392 = vmatprep.subr.bf16.mxu0 %v1804_v53  ;;  %1377 = vmatprep.subr.bf16.mxu1 %v1376_v42  ;;  %v1382_v54 = vpack.c.bf16 %v694_v50, %v693_v49 }
  0xd3   : > { %624 = vmatmul.mubr.f32.vlgmr.msra.gmra.mrb[0].mxu0 %v2124_v0 }
  0xd4   : > { %1394 = vmatpush3.bf16.msra.mxu0 %v1393_v52  ;;  %1290 = vmatprep.mubr.msk.f32.mxu0 %vm1805_vm0, %v1803_v8  ;;  %v712_v52 = vld [vmem:[#allocation11 + $0xe8] sm:$0xff] }
  0xd5   : > { %1395 = vmatprep.subr.bf16.mxu0 %v1804_v53  ;;  %1379 = vmatpush3.bf16.msra.mxu1 %v1378_v47  ;;  %v1384_v55 = vpack.c.bf16 %v712_v52, %v711_v51  ;;  %v1181_v52 = vld [vmem:[%s2237_s1] ss:$0 sm:$0xff] }
  0xd6   : > { %1381 = vmatprep.subr.bf16.mxu1 %v1380_v48 }
  0xd8   : > { %1397 = vmatpush3.bf16.msra.mxu0 %v1396_v56  ;;  %v695_v56 = vld [vmem:[#allocation11 + $0x60] sm:$0xff] }
  0xd9   : > { %1398 = vmatprep.subr.bf16.mxu0 %v1804_v53  ;;  %1383 = vmatpush3.bf16.msra.mxu1 %v1382_v54 }
  0xda   : > { %1385 = vmatprep.subr.bf16.mxu1 %v1384_v55 }
  0xdc   : > { %1400 = vmatpush3.bf16.msra.mxu0 %v1399_v59  ;;  %v714_v59 = vld [vmem:[#allocation11 + $0xf8] sm:$0xff] }
  0xdd   : > { %1401 = vmatprep.subr.bf16.mxu0 %v1804_v53 }
  0xe0   : > { %1403 = vmatpush3.bf16.msra.mxu0 %v1402_v3  ;;  %v549_v3 = vlaneseq }
  0xe1   : > { %1404 = vmatprep.subr.bf16.mxu0 %v1804_v53 }
  0xe2   : > { %v550_v4 = vshrl.u32 %v549_v3, 7 }
  0xe4   : > { %1406 = vmatpush3.bf16.msra.mxu0 %v1405_v6  ;;  %v551_v5 = vsub.s32 0, %v550_v4  ;;  %v547_v6 = vld [vmem:[%s2244_s8] sm:$0x3] }
  0xe5   : > { %1407 = vmatprep.subr.bf16.mxu0 %v1804_v53 }
 0x13d   : > { %v800_v60 = vpop.xlane.xlu0 %799 }
 0x13e   : > { %v802_v61 = vmul.f32 0.0078125, %v800_v60  ;;  %v1386_v60 = vpack.c.bf16 %v696_v57, %v695_v56  ;;  %v1182_v57 = vld [vmem:[%s2238_s2] ss:$0 sm:$0xff] }
 0x140   : > { %v2134_v62 = vsub.f32 %v2124_v0, %v802_v61  ;;  %v1408_v0 = vpack.c.bf16 %v838_v9, %v837_v7  ;;  %v1388_v61 = vpack.c.bf16 %v714_v59, %v713_v58  ;;  %1387 = vmatpush3.bf16.msra.mxu1 %v1386_v60  ;;  %v555_v7 = vsub.s32 1, %v550_v4 }
 0x141   : > { %v552_v9 = vrot.slane %v547_v6, %v551_v5 }
 0x142   : > { %v804_v63 = vmul.f32 %v2134_v62, %v2134_v62  ;;  %1409 = vmatpush3.bf16.msra.mxu0 %v1408_v0  ;;  %1389 = vmatprep.subr.bf16.mxu1 %v1388_v61  ;;  %v556_v0 = vrot.slane %v547_v6, %v555_v7 }
 0x143   : > { %1410 = vmatprep.subr.bf16.mxu0 %v1804_v53 }
 0x144   : > { %805 = vadd.xlane.f32.xlu0 %v804_v63  ;;  %v697_v63 = vld [vmem:[#allocation11 + $0x70] sm:$0xff] }
 0x145   : > { %v1390_v2 = vpack.c.bf16 %v698_v1, %v697_v63 }
 0x146   : > { %1412 = vmatpush3.bf16.msra.mxu0 %v1411_v12 }
 0x147   : > { %1413 = vmatprep.subr.bf16.mxu0 %v1804_v53  ;;  %1391 = vmatpush3.bf16.msra.mxu1 %v1390_v2 }
 0x148   : > { %1416 = vmatprep.subr.bf16.mxu1 %v1804_v53 }
 0x14a   : > { %1415 = vmatpush3.bf16.msra.mxu0 %v1414_v15 }
 0x1a6   : > { %v625_v10 = vpop.f32.mrb[0].mxu0 }
 0x1a7   : > { %v626_v11 = vadd.f32 %v625_v10, %v552_v9  ;;  %v627_v12 = vpop.f32.mrb[1].mxu0  ;;  %v921_v9 = vld [vmem:[#allocation8] sm:$0xff] }
 0x1a8   : > { %v628_v13 = vadd.f32 %v627_v12, %v556_v0  ;;  %v922_v0 = vld [vmem:[#allocation8 + $0x8] sm:$0xff] }
 0x1a9   : > { %v2148_v14 = vmul.f32 0.70710677, %v626_v11  ;;  %v630_v3 = vmul.f32 0.5, %v626_v11  ;;  %v925_v11 = vld [vmem:[#allocation8 + $0x20] sm:$0xff] }
 0x1aa   : > { %v2150_v15 = vmul.f32 0.70710677, %v628_v13 }
 0x1ab   : > { %v634_v16 = vand.u32 2147483647, %v2148_v14  ;;  %vm672_vm1 = vcmp.ge.f32.partialorder %v2148_v14, 0.0 }
 0x1ac   : > { %v635_v17 = vand.u32 2147483647, %v2150_v15  ;;  %vm673_vm2 = vcmp.ge.f32.partialorder %v2150_v15, 0.0 }
 0x1ad   : > { %v636_v18 = vmul.f32 0.3275911, %v634_v16  ;;  %v660_v22 = vsub.f32 0.0, %v634_v16 }
 0x1ae   : > { %v637_v19 = vmul.f32 0.3275911, %v635_v17  ;;  %v661_v23 = vsub.f32 0.0, %v635_v17 }
 0x1af   : > { %v638_v20 = vadd.f32 1.0, %v636_v18  ;;  %v662_v24 = vmul.f32 %v660_v22, %v634_v16  ;;  %v923_v18 = vld [vmem:[#allocation8 + $0x10] sm:$0xff] }
 0x1b0   : > { %v639_v21 = vadd.f32 1.0, %v637_v19  ;;  %v663_v25 = vmul.f32 %v661_v23, %v635_v17  ;;  %v1417_v17 = vpack.c.bf16 %v922_v0, %v921_v9  ;;  %v924_v19 = vld [vmem:[#allocation8 + $0x18] sm:$0xff]  ;;  %v929_v23 = vld [vmem:[#allocation8 + $0x40] sm:$0xff] }
 0x1b1   : > { %1550 = vrcp.f32 %v638_v20  ;;  %v664_v28 = vmul.f32 1.442695, %v662_v24  ;;  %v1420_v14 = vpack.c.bf16 %v924_v19, %v923_v18  ;;  %v927_v20 = vld [vmem:[#allocation8 + $0x30] sm:$0xff]  ;;  %v930_v24 = vld [vmem:[#allocation8 + $0x48] sm:$0xff] }
 0x1b2   : > { %1552 = vrcp.f32 %v639_v21  ;;  %v666_v31 = vmul.f32 1.442695, %v663_v25  ;;  %v928_v21 = vld [vmem:[#allocation8 + $0x38] sm:$0xff]  ;;  %v1429_v25 = vpack.c.bf16 %v930_v24, %v929_v23 }
 0x1b3   : > { %1554 = vpow2.f32 %v664_v28  ;;  %v1426_v22 = vpack.c.bf16 %v928_v21, %v927_v20  ;;  %v933_v28 = vld [vmem:[#allocation8 + $0x60] sm:$0xff] }
 0x1b4   : > { %1556 = vpow2.f32 %v666_v31  ;;  %v935_v31 = vld [vmem:[#allocation8 + $0x70] sm:$0xff] }
 0x1bb   : > { %v1551_v26 = vpop.eup %1550 }
 0x1bc   : > { %v1553_v27 = vpop.eup %1552  ;;  %v642_v29 = vmul.f32 1.0614054, %v1551_v26 }
 0x1bd   : > { %v643_v32 = vmul.f32 1.0614054, %v1553_v27  ;;  %v1555_v47 = vpop.eup %1554 }
 0x1be   : > { %v644_v34 = vadd.f32 -1.4531521, %v642_v29  ;;  %v1557_v49 = vpop.eup %1556  ;;  %v934_v29 = vld [vmem:[#allocation8 + $0x68] sm:$0xff] }
 0x1bf   : > { %v645_v35 = vadd.f32 -1.4531521, %v643_v32  ;;  %v936_v32 = vld [vmem:[#allocation8 + $0x78] sm:$0xff] }
 0x1c0   : > { %v646_v37 = vmul.f32 %v1551_v26, %v644_v34  ;;  %v1183_v34 = vld [vmem:[%s2281_s28] ss:$0 sm:$0xff]  ;;  %s2187_s28 = scalar_lea.hbm %s2284_s27, %s1186_s23 }
 0x1c1   : > { %v647_v38 = vmul.f32 %v1553_v27, %v645_v35 }
 0x1c2   : > { %v648_v39 = vadd.f32 1.4214138, %v646_v37 }
 0x1c3   : > { %v649_v40 = vadd.f32 1.4214138, %v647_v38 }
 0x1c4   : > { %v650_v41 = vmul.f32 %v1551_v26, %v648_v39 }
 0x1c5   : > { %v651_v42 = vmul.f32 %v1553_v27, %v649_v40 }
 0x1c6   : > { %v652_v43 = vadd.f32 -0.28449672, %v650_v41 }
 0x1c7   : > { %v653_v44 = vadd.f32 -0.28449672, %v651_v42  ;;  %v1184_v42 = vld [vmem:[%s2283_s25] ss:$0 sm:$0xff] }
 0x1c8   : > { %v654_v45 = vmul.f32 %v1551_v26, %v652_v43 }
 0x1c9   : > { %v655_v46 = vmul.f32 %v1553_v27, %v653_v44 }
 0x1ca   : > { %v656_v48 = vadd.f32 0.2548296, %v654_v45 }
 0x1cb   : > { %v657_v50 = vadd.f32 0.2548296, %v655_v46 }
 0x1cc   : > { %v658_v54 = vmul.f32 %v1551_v26, %v656_v48  ;;  %v932_v26 = vld [vmem:[#allocation8 + $0x58] sm:$0xff] }
 0x1cd   : > { %v659_v56 = vmul.f32 %v1553_v27, %v657_v50 }
 0x1ce   : > { %v668_v58 = vmul.f32 %v1555_v47, %v658_v54 }
 0x1cf   : > { %v669_v60 = vmul.f32 %v1557_v49, %v659_v56 }
 0x1d0   : > { %v670_v61 = vsub.f32 1.0, %v668_v58 }
 0x1d1   : > { %v806_v30 = vpop.xlane.xlu0 %805  ;;  %v671_v1 = vsub.f32 1.0, %v669_v60 }
 0x1d2   : > { %v807_v33 = vmul.f32 0.0078125, %v806_v30  ;;  %v674_v2 = vsub.f32 0.0, %v670_v61  ;;  %v1435_v30 = vpack.c.bf16 %v934_v29, %v933_v28 }
 0x1d3   : > { %v675_v4 = vsub.f32 0.0, %v671_v1 }
 0x1d4   : > { %v808_v36 = vadd.f32 1e-05, %v807_v33  ;;  %v676_v5 = vsel %vm672_vm1, %v670_v61, %v674_v2  ;;  %v1438_v33 = vpack.c.bf16 %v936_v32, %v935_v31 }
 0x1d5   : > { %v677_v6 = vsel %vm673_vm2, %v671_v1, %v675_v4  ;;  %v678_v7 = vadd.f32 1.0, %v676_v5 }
 0x1d6   : > { %1558 = vrsqrt.f32 %v808_v36  ;;  %v679_v10 = vadd.f32 1.0, %v677_v6 }
 0x1d7   : > { %v680_v12 = vmul.f32 %v678_v7, %v630_v3 }
 0x1e0   : > { %v1559_v51 = vpop.eup %1558 }
 0x1e1   : > { %v810_v55 = vmul.f32 %v1559_v51, %v2134_v62  ;;  %v631_v62 = vmul.f32 0.5, %v628_v13  ;;  %v926_v13 = vld [vmem:[#allocation8 + $0x28] sm:$0xff] }
 0x1e2   : > { %v1423_v15 = vpack.c.bf16 %v926_v13, %v925_v11 }
 0x1e3   : > { %v818_v59 = vmul.f32 %v1181_v52, %v810_v55  ;;  %v681_v16 = vmul.f32 %v679_v10, %v631_v62 }
 0x1e5   : > { %v826_v63 = vadd.f32 %v1182_v57, %v818_v59  ;;  %779 = vmatprep.mubr.f32.mxu1 %v681_v16 }
 0x1e6   : > { %780 = vmatmul.mubr.f32.vlgmr.msra.gmra.mrb[0].mxu1 %v680_v12 }
 0x1e7   : > { %1291 = vmatmul.mubr.f32.vlgmr.msra.gmra.mrb[2].mxu0 %v826_v63  ;;  %1418 = vmatpush3.bf16.msra.mxu1 %v1417_v17 }
 0x1e8   : > { %1325 = vmatprep.mubr.msk.f32.mxu1 %vm1805_vm0, %v1803_v8  ;;  %1419 = vmatprep.subr.bf16.mxu1 %v1804_v53  ;;  %v931_v8 = vld [vmem:[#allocation8 + $0x50] sm:$0xff] }
 0x1e9   : > { %v1432_v27 = vpack.c.bf16 %v932_v26, %v931_v8 }
 0x1eb   : > { %1421 = vmatpush3.bf16.msra.mxu1 %v1420_v14 }
 0x1ec   : > { %1422 = vmatprep.subr.bf16.mxu1 %v1804_v53 }
 0x1ef   : > { %1424 = vmatpush3.bf16.msra.mxu1 %v1423_v15 }
 0x1f0   : > { %1425 = vmatprep.subr.bf16.mxu1 %v1804_v53 }
 0x1f3   : > { %1427 = vmatpush3.bf16.msra.mxu1 %v1426_v22 }
 0x1f4   : > { %1428 = vmatprep.subr.bf16.mxu1 %v1804_v53 }
 0x1f7   : > { %1430 = vmatpush3.bf16.msra.mxu1 %v1429_v25 }
 0x1f8   : > { %1431 = vmatprep.subr.bf16.mxu1 %v1804_v53 }
 0x1fb   : > { %1433 = vmatpush3.bf16.msra.mxu1 %v1432_v27 }
 0x1fc   : > { %1434 = vmatprep.subr.bf16.mxu1 %v1804_v53 }
 0x1ff   : > { %1436 = vmatpush3.bf16.msra.mxu1 %v1435_v30 }
 0x200   : > { %1437 = vmatprep.subr.bf16.mxu1 %v1804_v53  ;;  %v1180_v53 = vld [vmem:[%s2282_s15] ss:$0 sm:$0xff]  ;;  %s1708_s15 = scalar_lea.vmem %s1707_s30, 256 }
 0x201   : > { %p1710_p7 = scmp.lt.s32.totalorder %s1708_s15, %s1702_s20 }
 0x203   : > { %1439 = vmatpush3.bf16.msra.mxu1 %v1438_v33  ;;  %p1711_p5 = por %p1710_p7, %p1709_p0 }
 0x205   : > { %p1712_p8 = pnand %p1711_p5, %p1705_p11 }
 0x2b9   : > { %v1221_v39 = vpop.f32.mrb[0].mxu1 }
 0x2ba   : > { %v916_v35 = vpop.f32.mrb[2].mxu0  ;;  %v1222_v40 = vpop.f32.mrb[1].mxu1 }
 0x2bb   : > { %v917_v36 = vadd.f32 %v1183_v34, %v916_v35  ;;  %v1292_v37 = vpop.f32.mrb[3].mxu0  ;;  %v1223_v41 = vadd.f32 %v1222_v40, %v1221_v39 }
 0x2bd   : > { %v920_v38 = vmax.f32 %v917_v36, 0.0  ;;  %v798_v44 = vadd.f32 %v1223_v41, %v1180_v53 }
 0x2bf   : > { %1326 = vmatmul.mubr.f32.vlgmr.msra.gmra.mrb[2].mxu1 %v920_v38 }
 0x392   : > { %v1010_v43 = vpop.f32.mrb[2].mxu1 }
 0x393   : > { %v1011_v45 = vadd.f32 %v1184_v42, %v1010_v43  ;;  %v1327_v46 = vpop.f32.mrb[3].mxu1 }
 0x395   : > { %v1014_v47 = vadd.f32 %v1011_v45, %v798_v44 }
 0x397   : > { %1015 = vst [vmem:[%s501_s4] sm:$0xff] %v1014_v47 }
 0x398   : > { %1715 = shalt.err (!%p1712_p8)
}
 0x399   : > { %s1716_s5 = scalar_lea.hbm %s2187_s28, 128  ;;  %s1720_s25 = scalar_lea.hbm %s2284_s27, 256 }
 0x39a   : > { %p1717_p1 = scmp.ne.s32.totalorder %s2187_s28, %s1716_s5  ;;  %p1721_p13 = scmp.lt.u32.totalorder %s2187_s28, %s2284_s27 }
 0x39b   : > { %p1722_p12 = scmp.lt.u32.totalorder %s1720_s25, %s1716_s5  ;;  %p1724_p2 = scmp.lt.u32.totalorder %s1716_s5, %s2187_s28 }
 0x39c   : > { %p1718_p3 = pnand %p1717_p1, %p2285_p9 }
 0x39d   : > { %p1723_p4 = por %p1722_p12, %p1721_p13 }
 0x39e   : > { %p1719_p6 = pneg %p1718_p3 }
 0x39f   : > { %p1725_p10 = por %p1724_p2, %p1723_p4 }
 0x3a1   : > { %p1726_p11 = pnand %p1725_p10, %p1719_p6 }
 0x3a3   : > { %1729 = shalt.err (!%p1726_p11)
}
 0x3a4   : > { %1458 = dma.vmem_to_hbm [thread:$0]  (%p2285_p9), %s2189_s13, 128, %s2187_s28, %s1017_s10  }
 0x3a5 PF: > { %s1042_s29 = sand.u32 1, %s1772_s17   ;;  %p2286_p0 = scmp.ne.s32.totalorder %s2277_s12, 0 }
 0x3a6   : > { %p2287_p7 = scmp.ge.s32.totalorder %s1792_s22, 2  ;;  %s1043_s3 = scalar_lea.sflag [#allocation5], %s1042_s29 }
 0x3a8   : > { %p1478_p5 = pnand %p2287_p7, %p2286_p0 }
 0x3aa   : > { %1767 = dma.done.wait (!%p1478_p5), %s1043_s3, 128  }
 0x3ab   : > { %1769 = vsyncadd (!%p1478_p5), %s1043_s3, 4294967168  ;;  %s29_s22 = sadd.s32 1, %s1792_s22   ;;  %s2288_s17 = smov %s1776_s18 }
 0x3ac   : > { %p26_p8 = scmp.ge.s32.totalorder %s29_s22, 4   ;;  %s2289_s18 = smov %s1780_s19 }
 0x3ad   : > { %s2290_s19 = smov %s2056_s16  ;;  %s2291_s20 = smov %s1788_s21 }
 0x3ae   : > { %s2292_s21 = smov %s2294_s26  ;;  %28 = sbr.rel (!%p26_p8) target bundleno = 15 (0xf), region = 138 }
 0x3b5   :  { %1048 = vsyncpa [#allocation4], 1 }
 0x3b6   :  { %1050 = vsyncpa [#allocation4 + $0x1], 1 }
 0x3b7   :  { %1051 = vsyncpa [#allocation7], 1 }
 0x3b8   :  { %1052 = vsyncpa [#allocation10], 1 }
 0x3b9   :  { %1053 = vsyncpa [#allocation5], 1 }
 0x3ba   :  { %1055 = vsyncpa [#allocation5 + $0x1], 1 }

</bundles_post_ra>
